<compile_context>
chip_gen: v7x
topology: tpu7x:2x2x1
jax: 0.10.0
libtpu: 0.0.40
codegen_flags: <defaults>
</compile_context>

<pallas_src>
import jax
import jax.numpy as jnp
from jax.experimental import pallas as pl
from jax.experimental.pallas import tpu as pltpu

LANES = 128
SUBLANES = 8
MAX_ROW_TILE = 8192   # (8192, 128) f32 block = 4 MiB per input per buffer
NUM_CORES = 2         # leading "parallel" axis (v7x megacore; no-op elsewhere)


def _make_msle_kernel(row_tile, last_rows, num_blocks, bpc, has_oob):
    """Build the MSLE partial-sum kernel for one static configuration."""
    ragged = last_rows < row_tile

    def accum(p, a, acc_ref):
        d = jnp.log(p) - jnp.log(a)
        sq = d * d
        # Groups of 8 rows == one f32 vreg -> reshape is free; leading-axis
        # sum is pure VPU vreg adds.  Single XLU reduce happens in the
        # wrapper on the tiny (num_cores, 8, 128) output.
        acc_ref[...] += jnp.sum(sq.reshape(-1, SUBLANES, LANES), axis=0)

    def kernel(p_ref, a_ref, o_ref, acc_ref):
        c = pl.program_id(0)      # core (parallel) axis
        i = pl.program_id(1)      # block (arbitrary / reduction) axis
        b = c * bpc + i           # global block index

        @pl.when(i == 0)
        def _():
            acc_ref[...] = jnp.zeros_like(acc_ref)

        if not ragged and not has_oob:
            # Common case: every grid step owns a full, valid block.
            accum(p_ref[...].astype(jnp.float32),
                  a_ref[...].astype(jnp.float32), acc_ref)
        else:
            last_full = num_blocks - 1 if ragged else num_blocks

            @pl.when(b < last_full)
            def _():
                accum(p_ref[...].astype(jnp.float32),
                      a_ref[...].astype(jnp.float32), acc_ref)

            if ragged:
                # Single partial last block: mask garbage rows with 1.0
                # before the log -> log(1) = 0 -> zero contribution.
                @pl.when(b == num_blocks - 1)
                def _():
                    row_ids = jax.lax.broadcasted_iota(
                        jnp.int32, (row_tile, LANES), 0)
                    mask = row_ids < last_rows
                    p = jnp.where(mask, p_ref[...].astype(jnp.float32), 1.0)
                    a = jnp.where(mask, a_ref[...].astype(jnp.float32), 1.0)
                    accum(p, a, acc_ref)

        @pl.when(i == bpc - 1)
        def _():
            o_ref[0] = acc_ref[...]   # per-core (8, 128) partial sums

    return kernel


def msle(pred, actual):
    assert pred.shape == actual.shape, "pred/actual must have the same shape"
    n = pred.size
    pf = jnp.ravel(pred)
    af = jnp.ravel(actual)

    rows = (n // (SUBLANES * LANES)) * SUBLANES   # 8-aligned rows of 128 lanes
    main = rows * LANES                           # elements handled by kernel

    total = jnp.zeros((), jnp.float32)

    if main > 0:
        # Free bitcast reshape when n is 8*128-aligned (common NN-tensor
        # case); otherwise only the aligned prefix is sliced and the small
        # tail is reduced in plain JAX below (no padded full-array copies).
        p2 = pf[:main].reshape(rows, LANES)
        a2 = af[:main].reshape(rows, LANES)

        row_tile = min(MAX_ROW_TILE, rows)        # multiple of 8 either way
        num_blocks = pl.cdiv(rows, row_tile)
        num_cores = NUM_CORES if num_blocks >= NUM_CORES else 1
        bpc = pl.cdiv(num_blocks, num_cores)      # blocks per core
        last_rows = rows - (num_blocks - 1) * row_tile
        has_oob = num_cores * bpc != num_blocks

        if has_oob:
            # Clamp out-of-range blocks of the rectangular grid; their
            # compute is gated off inside the kernel.
            def in_map(c, i):
                return (jnp.minimum(c * bpc + i, num_blocks - 1), 0)
        else:
            def in_map(c, i):
                return (c * bpc + i, 0)

        kernel = _make_msle_kernel(row_tile, last_rows, num_blocks, bpc,
                                   has_oob)

        partials = pl.pallas_call(
            kernel,
            out_shape=jax.ShapeDtypeStruct((num_cores, SUBLANES, LANES),
                                           jnp.float32),
            grid_spec=pltpu.PrefetchScalarGridSpec(
                num_scalar_prefetch=0,
                grid=(num_cores, bpc),
                in_specs=[
                    pl.BlockSpec((row_tile, LANES), in_map),
                    pl.BlockSpec((row_tile, LANES), in_map),
                ],
                out_specs=pl.BlockSpec((1, SUBLANES, LANES),
                                       lambda c, i: (c, 0, 0)),
                scratch_shapes=[pltpu.VMEM((SUBLANES, LANES), jnp.float32)],
            ),
            compiler_params=pltpu.CompilerParams(
                dimension_semantics=("parallel", "arbitrary"),
                vmem_limit_bytes=32 * 1024 * 1024,
            ),
        )(p2, a2)
        total = total + jnp.sum(partials)

    if main < n:
        # Ragged tail (< 1024 elements): plain JAX.
        pt = pf[main:].astype(jnp.float32)
        at = af[main:].astype(jnp.float32)
        total = total + jnp.sum((jnp.log(pt) - jnp.log(at)) ** 2)

    # Mean reduction (MSELoss default).
    return total / n


if __name__ == "__main__":
    key = jax.random.PRNGKey(0)
    k1, k2 = jax.random.split(key)
    shape = (2, 4, 16, 16)  # small NCHW-like shape
    # Positive inputs (log requires > 0), mirroring typical MSLE usage.
    pred = jax.random.uniform(k1, shape, jnp.float32, minval=0.1, maxval=5.0)
    actual = jax.random.uniform(k2, shape, jnp.float32, minval=0.1, maxval=5.0)

    result = msle(pred, actual)
    jax.block_until_ready(result)

    # Reference check in plain JAX.
    ref = jnp.mean((jnp.log(pred) - jnp.log(actual)) ** 2)
    assert jnp.allclose(result, ref, rtol=1e-5, atol=1e-6), (result, ref)

    print("KERNEL_OK")
</pallas_src>

<mosaic_0001>
module attributes {stable_mosaic.version = 11 : i64} {
  func.func @kernel(%arg0: i32, %arg1: i32, %arg2: memref<16x128xf32, #tpu.memory_space<vmem>>, %arg3: memref<16x128xf32, #tpu.memory_space<vmem>>, %arg4: memref<1x8x128xf32, #tpu.memory_space<vmem>>, %arg5: memref<8x128xf32, #tpu.memory_space<vmem>>) attributes {dimension_semantics = [#tpu.dimension_semantics<parallel>, #tpu.dimension_semantics<arbitrary>], iteration_bounds = array<i64: 1, 1>, scalar_prefetch = 0 : i64, scratch_operands = 1 : i64, tpu.core_type = #tpu.core_type<tc>, window_params = [{transform_indices = @transform_0, window_bounds = array<i64: 16, 128>}, {transform_indices = @transform_1, window_bounds = array<i64: 16, 128>}, {transform_indices = @transform_2, window_bounds = array<i64: 1, 8, 128>}]} {
    %c0_i32 = arith.constant 0 : i32
    %0 = arith.cmpi eq, %arg1, %c0_i32 : i32
    %1 = arith.extui %0 : i1 to i32
    %c0_i32_0 = arith.constant 0 : i32
    %2 = arith.cmpi ne, %1, %c0_i32_0 : i32
    scf.if %2 {
      %cst_10 = arith.constant 0.000000e+00 : f32
      %17 = vector.broadcast %cst_10 : f32 to vector<8x128xf32>
      %c0_11 = arith.constant 0 : index
      %c0_12 = arith.constant 0 : index
      %18 = vector.load %arg5[%c0_11, %c0_12] : memref<8x128xf32, #tpu.memory_space<vmem>>, vector<8x128xf32>
      tpu.vector_store %arg5[%c0_11, %c0_12], %17 {strides = array<i32>} : memref<8x128xf32, #tpu.memory_space<vmem>>, vector<8x128xf32>,
    } else {
    }
    %c0 = arith.constant 0 : index
    %c0_1 = arith.constant 0 : index
    %3 = vector.load %arg2[%c0, %c0_1] : memref<16x128xf32, #tpu.memory_space<vmem>>, vector<16x128xf32>
    %c0_2 = arith.constant 0 : index
    %c0_3 = arith.constant 0 : index
    %4 = vector.load %arg3[%c0_2, %c0_3] : memref<16x128xf32, #tpu.memory_space<vmem>>, vector<16x128xf32>
    %5 = math.log %3 : vector<16x128xf32>
    %6 = math.log %4 : vector<16x128xf32>
    %7 = arith.subf %5, %6 : vector<16x128xf32>
    %8 = arith.mulf %7, %7 : vector<16x128xf32>
    %c0_4 = arith.constant 0 : index
    %c0_5 = arith.constant 0 : index
    %9 = vector.load %arg5[%c0_4, %c0_5] : memref<8x128xf32, #tpu.memory_space<vmem>>, vector<8x128xf32>
    %10 = vector.shape_cast %8 : vector<16x128xf32> to vector<2x8x128xf32>
    %cst = arith.constant dense<0.000000e+00> : vector<8x128xf32>
    %11 = vector.multi_reduction <add>, %10, %cst [0] : vector<2x8x128xf32> to vector<8x128xf32>
    %12 = arith.addf %9, %11 : vector<8x128xf32>
    %c0_6 = arith.constant 0 : index
    %c0_7 = arith.constant 0 : index
    %13 = vector.load %arg5[%c0_6, %c0_7] : memref<8x128xf32, #tpu.memory_space<vmem>>, vector<8x128xf32>
    tpu.vector_store %arg5[%c0_6, %c0_7], %12 {strides = array<i32>} : memref<8x128xf32, #tpu.memory_space<vmem>>, vector<8x128xf32>,
    %c0_i32_8 = arith.constant 0 : i32
    %14 = arith.cmpi eq, %arg1, %c0_i32_8 : i32
    %15 = arith.extui %14 : i1 to i32
    %c0_i32_9 = arith.constant 0 : i32
    %16 = arith.cmpi ne, %15, %c0_i32_9 : i32
    scf.if %16 {
      %c0_10 = arith.constant 0 : index
      %c0_11 = arith.constant 0 : index
      %17 = vector.load %arg5[%c0_10, %c0_11] : memref<8x128xf32, #tpu.memory_space<vmem>>, vector<8x128xf32>
      %c0_12 = arith.constant 0 : index
      %c0_13 = arith.constant 0 : index
      %c0_14 = arith.constant 0 : index
      %18 = vector.load %arg4[%c0_12, %c0_13, %c0_14] : memref<1x8x128xf32, #tpu.memory_space<vmem>>, vector<1x8x128xf32>
      %19 = vector.shape_cast %18 : vector<1x8x128xf32> to vector<8x128xf32>
      %20 = vector.shape_cast %17 : vector<8x128xf32> to vector<1x8x128xf32>
      tpu.vector_store %arg4[%c0_12, %c0_13, %c0_14], %20 {strides = array<i32>} : memref<1x8x128xf32, #tpu.memory_space<vmem>>, vector<1x8x128xf32>,
    } else {
    }
    return
  }
  func.func @transform_0(%arg0: i32, %arg1: i32) -> (i32, i32) {
    %c1_i32 = arith.constant 1 : i32
    %0 = arith.muli %arg0, %c1_i32 : i32
    %1 = arith.addi %0, %arg1 : i32
    %c0_i32 = arith.constant 0 : i32
    %c0_i32_0 = arith.constant 0 : i32
    return %1, %c0_i32 : i32, i32
  }
  func.func @transform_1(%arg0: i32, %arg1: i32) -> (i32, i32) {
    %c1_i32 = arith.constant 1 : i32
    %0 = arith.muli %arg0, %c1_i32 : i32
    %1 = arith.addi %0, %arg1 : i32
    %c0_i32 = arith.constant 0 : i32
    %c0_i32_0 = arith.constant 0 : i32
    return %1, %c0_i32 : i32, i32
  }
  func.func @transform_2(%arg0: i32, %arg1: i32) -> (i32, i32, i32) {
    %c0_i32 = arith.constant 0 : i32
    %c0_i32_0 = arith.constant 0 : i32
    %c0_i32_1 = arith.constant 0 : i32
    return %arg0, %c0_i32, %c0_i32_0 : i32, i32, i32
  }
}

</mosaic_0001>

<bundles_post_ra>
// kernel: tpu_custom_call.1
= control target key start
LH: loop header
LB: loop body
LE: loop exit
PB: predicated region body
PF: predicated region fallthrough
CT: control target
= control target key end

     0   :  { %7 = vsyncpa [#allocation4], 0  ;;  %s239_s0 = inlined_call_operand.hbm [shape: f32[16,128], index: 0, kind: input, shape index: {}]   ;;  %s240_s1 = inlined_call_operand.hbm [shape: f32[16,128], index: 1, kind: input, shape index: {}]   ;;  %s241_s2 = inlined_call_operand.hbm [shape: f32[1,8,128], index: 2, kind: output, shape index: {}]  }
   0x1   :  { %8 = vsyncpa [#allocation7], 0 }
   0x2   :  { %9 = vsyncpa [#allocation5], 0  ;;  %s183_s9 = smov [#allocation3]   ;;  %s111_s13 = scalar_lea.hbm %s239_s0, 256 }
   0x3   :  { %s19_s10 = sshll.u32 %s183_s9, 4  ;;  %p112_p0 = scmp.ne.s32.totalorder %s239_s0, %s111_s13  ;;  %s20_s10 = int_to_ptr.vmem [resolvable:$true] %s19_s10 }
   0x4   :  { %p115_p1 = scmp.lt.u32.totalorder %s111_s13, %s239_s0 }
   0x6   :  { %p117_p2 = pnand %p115_p1, %p112_p0 }
   0x8   :  { %120 = shalt.err (!%p117_p2)
}
   0x9   :  { %s121_s18 = scalar_lea.vmem %s20_s10, 256  ;;  %p126_p4 = scmp.lt.s32.totalorder %s20_s10, %s20_s10 }
   0xa   :  { %p122_p3 = scmp.ne.s32.totalorder %s20_s10, %s121_s18  ;;  %p127_p5 = scmp.lt.s32.totalorder %s121_s18, %s121_s18 }
   0xc   :  { %p128_p6 = por %p127_p5, %p126_p4 }
   0xe   :  { %p129_p7 = pnand %p128_p6, %p122_p3 }
  0x10   :  { %132 = shalt.err (!%p129_p7)
}
  0x11   :  { %s184_s19 = smov 128   ;;  %s185_s20 = smov 8  }
  0x12   :  { %25 = dma.hbm_to_vmem [thread:$0]  %s239_s0, 256, %s20_s10, [#allocation4], %s184_s19, %s184_s19, %s185_s20  }
  0x13   :  { %s186_s23 = smov [#allocation6]   ;;  %s133_s27 = scalar_lea.hbm %s240_s1, 256 }
  0x14   :  { %s35_s24 = sshll.u32 %s186_s23, 4  ;;  %p134_p8 = scmp.ne.s32.totalorder %s240_s1, %s133_s27  ;;  %s36_s24 = int_to_ptr.vmem [resolvable:$true] %s35_s24 }
  0x15   :  { %p137_p9 = scmp.lt.u32.totalorder %s133_s27, %s240_s1 }
  0x17   :  { %p139_p10 = pnand %p137_p9, %p134_p8 }
  0x19   :  { %142 = shalt.err (!%p139_p10)
}
  0x1a   :  { %s143_s4 = scalar_lea.vmem %s36_s24, 256  ;;  %p148_p12 = scmp.lt.s32.totalorder %s36_s24, %s36_s24 }
  0x1b   :  { %p144_p11 = scmp.ne.s32.totalorder %s36_s24, %s143_s4  ;;  %p149_p13 = scmp.lt.s32.totalorder %s143_s4, %s143_s4 }
  0x1d   :  { %p150_p0 = por %p149_p13, %p148_p12 }
  0x1f   :  { %p151_p1 = pnand %p150_p0, %p144_p11 }
  0x21   :  { %154 = shalt.err (!%p151_p1)
}
  0x22   :  { %41 = dma.hbm_to_vmem [thread:$0]  %s240_s1, 256, %s36_s24, [#allocation7], %s184_s19, %s184_s19, %s185_s20  }
  0x23   :  { %177 = dma.done.wait [#allocation4], 256  }
  0x24   :  { %178 = vsyncadd [#allocation4], 4294967040 }
  0x25   :  { %179 = dma.done.wait [#allocation7], 256  }
  0x26   :  { %180 = vsyncadd [#allocation7], 4294967040  ;;  %v57_v0 = vld [vmem:[#allocation3] sm:$0xff]  ;;  %v58_v1 = vld [vmem:[#allocation3 + $0x8] sm:$0xff]  ;;  %s187_s1 = smov [#allocation8]  }
  0x27   :  { %v59_v2 = vld [vmem:[#allocation6] sm:$0xff]  ;;  %v60_v3 = vld [vmem:[#allocation6 + $0x8] sm:$0xff]  ;;  %103 = vlog2.f32 %v57_v0  ;;  %s88_s6 = sshll.u32 %s187_s1, 4  ;;  %s89_s6 = int_to_ptr.vmem [resolvable:$true] %s88_s6 }
  0x28   :  { %105 = vlog2.f32 %v58_v1  ;;  %s155_s7 = scalar_lea.vmem %s89_s6, 128  ;;  %p160_p3 = scmp.lt.s32.totalorder %s89_s6, %s89_s6 }
  0x29   :  { %107 = vlog2.f32 %v59_v2  ;;  %p156_p2 = scmp.ne.s32.totalorder %s89_s6, %s155_s7  ;;  %p161_p4 = scmp.lt.s32.totalorder %s155_s7, %s155_s7 }
  0x2a   :  { %109 = vlog2.f32 %v60_v3 }
  0x2b   :  { %p162_p5 = por %p161_p4, %p160_p3 }
  0x2d   :  { %p163_p6 = pnand %p162_p5, %p156_p2 }
  0x31   :  { %v104_v4 = vpop.eup %103 }
  0x32   :  { %v106_v5 = vpop.eup %105  ;;  %v62_v6 = vmul.f32 0.6931472, %v104_v4 }
  0x33   :  { %v108_v7 = vpop.eup %107  ;;  %v64_v8 = vmul.f32 0.6931472, %v106_v5 }
  0x34   :  { %v110_v9 = vpop.eup %109  ;;  %v66_v10 = vmul.f32 0.6931472, %v108_v7 }
  0x35   :  { %v68_v11 = vmul.f32 0.6931472, %v110_v9 }
  0x36   :  { %v69_v12 = vsub.f32 %v62_v6, %v66_v10 }
  0x37   :  { %v70_v13 = vsub.f32 %v64_v8, %v68_v11 }
  0x38   :  { %v71_v14 = vmul.f32 %v69_v12, %v69_v12 }
  0x39   :  { %v72_v15 = vmul.f32 %v70_v13, %v70_v13 }
  0x3b   :  { %v74_v16 = vadd.f32 %v72_v15, %v71_v14 }
  0x3d   :  { %81 = vst [vmem:[#allocation8] sm:$0xff] %v74_v16 }
  0x3e   :  { %166 = shalt.err (!%p163_p6)
}
  0x3f   :  { %s167_s10 = scalar_lea.hbm %s241_s2, 128 }
  0x40   :  { %p168_p7 = scmp.ne.s32.totalorder %s241_s2, %s167_s10  ;;  %p171_p8 = scmp.lt.u32.totalorder %s167_s10, %s241_s2 }
  0x42   :  { %p173_p9 = pnand %p171_p8, %p168_p7 }
  0x44   :  { %176 = shalt.err (!%p173_p9)
}
  0x45   :  { %91 = dma.vmem_to_hbm [thread:$0]  %s89_s6, 128, %s241_s2, [#allocation5]  }
  0x46   :  { %181 = dma.done.wait [#allocation5], 128  }
  0x47   :  { %182 = vsyncadd [#allocation5], 4294967168 }
  0x48   :  { %95 = vsyncpa [#allocation4], 1 }
  0x49   :  { %96 = vsyncpa [#allocation7], 1 }
  0x4a   :  { %97 = vsyncpa [#allocation5], 1 }

</bundles_post_ra>
